<compile_context>
chip_gen: v5e
topology: v5e:2x2
jax: 0.10.0
libtpu: 0.0.40
codegen_flags: <defaults>
</compile_context>

<pallas_src>
import jax
import jax.numpy as jnp
from jax.experimental import pallas as pl
from jax.experimental.pallas import tpu as pltpu


def _h_sigmoid_kernel(x_ref, o_ref):
    x = x_ref[...]
    three = jnp.asarray(3.0, x.dtype)
    zero = jnp.asarray(0.0, x.dtype)
    six = jnp.asarray(6.0, x.dtype)
    # relu6(x + 3) / 6  == clamp(x + 3, 0, 6) / 6   (exact divide for parity)
    o_ref[...] = (jnp.clip(x + three, zero, six) / six).astype(o_ref.dtype)


def _sublane_for(itemsize: int) -> int:
    # Native sublane tiling: f32 -> (8,128), bf16 -> (16,128), int8/fp8 -> (32,128).
    return {4: 8, 2: 16, 1: 32}.get(itemsize, 8)


def h_sigmoid(x, *, target_block_bytes=4 << 20):
    """Elementwise hard-sigmoid (relu6(x+3)/6). Accepts any-rank input (e.g. NCHW)."""
    orig_shape = x.shape
    dtype = x.dtype
    n = int(x.size)
    if n == 0:
        return x  # nothing to do for empty tensors

    itemsize = jnp.dtype(dtype).itemsize
    sublane = _sublane_for(itemsize)

    # Lane-dense layout: fold the flat tensor into (rows, lane) with lane a
    # multiple of 128 that divides n exactly -> no extra pad/slice HBM passes.
    lane = next((c for c in (1024, 512, 256, 128) if n % c == 0), None)
    pad = 0
    if lane is None:
        lane = 128
        pad = (-n) % lane  # rare fallback: n not a multiple of 128

    flat = x.reshape(-1)
    if pad:
        flat = jnp.pad(flat, (0, pad))
    rows = flat.size // lane
    x2 = flat.reshape(rows, lane)

    # Rows per ~target_block_bytes block, rounded to the dtype's native sublane.
    rows_per_block = max(
        sublane, (target_block_bytes // (lane * itemsize)) // sublane * sublane)

    if rows <= rows_per_block:
        if rows >= 2 * sublane:
            # Split into >=2 grid steps so both v7x TensorCores stream HBM.
            half = pl.cdiv(rows, 2)
            tm = ((half + sublane - 1) // sublane) * sublane
        else:
            tm = rows  # single full-array block (legal: equals full first dim)
    else:
        tm = rows_per_block
        # Prefer a tm that divides rows so the tail step isn't an overhang block
        # (avoids masked partial stores / partially wasted DMA).
        if rows % tm != 0:
            t = tm
            floor = max(sublane, rows_per_block // 2)
            while t >= floor:
                if rows % t == 0:
                    tm = t
                    break
                t -= sublane

    grid = (pl.cdiv(rows, tm),)
    block_bytes = tm * lane * itemsize
    # 2 streams (in + out) x 2 pipeline buffers x block, plus headroom.
    # Explicit limit also covers v5e (16 MiB scoped default) with 4 MiB blocks.
    vmem_limit = int(min(64 << 20, max(16 << 20, 4 * block_bytes + (4 << 20))))

    out2 = pl.pallas_call(
        _h_sigmoid_kernel,
        out_shape=jax.ShapeDtypeStruct((rows, lane), dtype),
        grid_spec=pltpu.PrefetchScalarGridSpec(
            num_scalar_prefetch=0,
            grid=grid,
            in_specs=[pl.BlockSpec((tm, lane), lambda i: (i, 0))],
            out_specs=pl.BlockSpec((tm, lane), lambda i: (i, 0)),
        ),
        compiler_params=pltpu.CompilerParams(
            dimension_semantics=("parallel",),   # shards across v7x's 2 TCs
            vmem_limit_bytes=vmem_limit,
        ),
        cost_estimate=pl.CostEstimate(
            flops=3 * rows * lane,
            transcendentals=0,
            bytes_accessed=2 * rows * lane * itemsize),
    )(x2)

    if pad:
        return out2.reshape(-1)[:n].reshape(orig_shape)
    return out2.reshape(orig_shape)


if __name__ == "__main__":
    key = jax.random.PRNGKey(0)
    # NCHW, same convention as the PyTorch module's usual input.
    x = jax.random.normal(key, (2, 4, 16, 16), dtype=jnp.float32) * 4.0

    out = jax.block_until_ready(h_sigmoid(x))

    # Reference check in plain JAX.
    ref = jnp.clip(x + 3.0, 0.0, 6.0) / 6.0
    assert out.shape == x.shape and out.dtype == x.dtype
    assert jnp.max(jnp.abs(out - ref)) < 1e-6

    print("KERNEL_OK")
</pallas_src>

<mosaic_0001>
module attributes {stable_mosaic.version = 11 : i64} {
  func.func @_h_sigmoid_kernel(%arg0: i32, %arg1: memref<2x1024xf32, #tpu.memory_space<vmem>>, %arg2: memref<2x1024xf32, #tpu.memory_space<vmem>>) attributes {dimension_semantics = [#tpu.dimension_semantics<parallel>], iteration_bounds = array<i64: 1>, scalar_prefetch = 0 : i64, scratch_operands = 0 : i64, tpu.core_type = #tpu.core_type<tc>, window_params = [{transform_indices = @transform_0, window_bounds = array<i64: 2, 1024>}, {transform_indices = @transform_1, window_bounds = array<i64: 2, 1024>}]} {
    %c0 = arith.constant 0 : index
    %c0_0 = arith.constant 0 : index
    %0 = vector.load %arg1[%c0, %c0_0] : memref<2x1024xf32, #tpu.memory_space<vmem>>, vector<2x1024xf32>
    %cst = arith.constant 3.000000e+00 : f32
    %1 = vector.broadcast %cst : f32 to vector<2x1024xf32>
    %2 = arith.addf %0, %1 : vector<2x1024xf32>
    %cst_1 = arith.constant 0.000000e+00 : f32
    %cst_2 = arith.constant 6.000000e+00 : f32
    %3 = vector.broadcast %cst_1 : f32 to vector<2x1024xf32>
    %4 = arith.maximumf %3, %2 : vector<2x1024xf32>
    %5 = vector.broadcast %cst_2 : f32 to vector<2x1024xf32>
    %6 = arith.minimumf %5, %4 : vector<2x1024xf32>
    %cst_3 = arith.constant 6.000000e+00 : f32
    %7 = vector.broadcast %cst_3 : f32 to vector<2x1024xf32>
    %8 = arith.divf %6, %7 : vector<2x1024xf32>
    %c0_4 = arith.constant 0 : index
    %c0_5 = arith.constant 0 : index
    %9 = vector.load %arg2[%c0_4, %c0_5] : memref<2x1024xf32, #tpu.memory_space<vmem>>, vector<2x1024xf32>
    tpu.vector_store %arg2[%c0_4, %c0_5], %8 {strides = array<i32>} : memref<2x1024xf32, #tpu.memory_space<vmem>>, vector<2x1024xf32>,
    return
  }
  func.func @transform_0(%arg0: i32) -> (i32, i32) {
    %c0_i32 = arith.constant 0 : i32
    %c0_i32_0 = arith.constant 0 : i32
    return %arg0, %c0_i32 : i32, i32
  }
  func.func @transform_1(%arg0: i32) -> (i32, i32) {
    %c0_i32 = arith.constant 0 : i32
    %c0_i32_0 = arith.constant 0 : i32
    return %arg0, %c0_i32 : i32, i32
  }
}

</mosaic_0001>

<bundles_post_ra>
// kernel: tpu_custom_call.1
= control target key start
LH: loop header
LB: loop body
LE: loop exit
PB: predicated region body
PF: predicated region fallthrough
CT: control target
= control target key end

     0   :  { %6 = vsyncpa [#allocation3], 0  ;;  %s135_s0 = inlined_call_operand.hbm [shape: f32[2,1024], index: 0, kind: input, shape index: {}]   ;;  %s136_s1 = inlined_call_operand.hbm [shape: f32[2,1024], index: 1, kind: output, shape index: {}]  }
   0x1   :  { %7 = vsyncpa [#allocation4], 0  ;;  %s13_s8 = sshll.u32 %s135_s0, 4  ;;  %s116_s9 = smov [#allocation2]   ;;  %s14_s8 = int_to_ptr.hbm [resolvable:$true] %s13_s8 }
   0x2   :  { %s15_s10 = sshll.u32 %s116_s9, 4  ;;  %s16_s10 = int_to_ptr.vmem [resolvable:$true] %s15_s10 }
   0x3   :  { %18 = dma.hbm_to_vmem [thread:$0]  %s14_s8, 256, %s16_s10, [#allocation3]  }
   0x4   :  { %112 = dma.done.wait [#allocation3], 256  }
   0x5   :  { %113 = vsyncadd [#allocation3], 4294967040  ;;  %v117_v0 = vmov 6.0   ;;  %v23_v2 = vld [vmem:[#allocation2] sm:$0xff]  ;;  %v24_v3 = vld [vmem:[#allocation2 + $0x8] sm:$0xff]  ;;  %s118_s0 = smov [#allocation5]  }
   0x6   :  { %62 = vrcp.f32 %v117_v0  ;;  %v25_v4 = vadd.f32 3.0, %v23_v2  ;;  %v26_v6 = vadd.f32 3.0, %v24_v3  ;;  %s47_s11 = sshll.u32 %s118_s0, 4  ;;  %s49_s14 = sshll.u32 %s136_s1, 4  ;;  %s48_s11 = int_to_ptr.vmem [resolvable:$true] %s47_s11  ;;  %s50_s14 = int_to_ptr.hbm [resolvable:$true] %s49_s14 }
   0x8   :  { %v27_v7 = vmax.f32 %v25_v4, 0.0  ;;  %v28_v9 = vmax.f32 %v26_v6, 0.0 }
   0xa   :  { %v29_v11 = vmin.f32 %v27_v7, 6.0  ;;  %v30_v12 = vmin.f32 %v28_v9, 6.0 }
   0xc   :  { %v63_v1 = vpop.eup %62 }
   0xd   :  { %v32_v5 = vmul.f32 6.0, %v63_v1  ;;  %vm36_vm0 = vweird.f32 %v63_v1 }
   0xf   :  { %v33_v8 = vsub.f32 1.0, %v32_v5 }
  0x11   :  { %v34_v10 = vmul.f32 %v63_v1, %v33_v8 }
  0x13   :  { %v35_v13 = vadd.f32 %v63_v1, %v34_v10 }
  0x15   :  { %v37_v14 = vsel %vm36_vm0, %v63_v1, %v35_v13 }
  0x16   :  { %v38_v15 = vmul.f32 %v37_v14, %v29_v11  ;;  %v39_v16 = vmul.f32 %v37_v14, %v30_v12 }
  0x18   :  { %40 = vst [vmem:[#allocation5] sm:$0xff] %v38_v15 }
  0x19   :  { %41 = vst [vmem:[#allocation5 + $0x8] sm:$0xff] %v39_v16 }
  0x1a   :  { %52 = dma.vmem_to_hbm [thread:$0]  %s48_s11, 256, %s50_s14, [#allocation4]  }
  0x1b   :  { %114 = dma.done.wait [#allocation4], 256  }
  0x1c   :  { %115 = vsyncadd [#allocation4], 4294967040 }
  0x1d   :  { %57 = vsyncpa [#allocation3], 1 }
  0x1e   :  { %58 = vsyncpa [#allocation4], 1 }

</bundles_post_ra>
